<compile_context>
chip_gen: v7x
topology: tpu7x:2x2x1
jax: 0.10.0
libtpu: 0.0.40
codegen_flags: <defaults>
</compile_context>

<pallas_src>
import functools
import math

import jax
import jax.numpy as jnp
from jax.experimental import pallas as pl
from jax.experimental.pallas import tpu as pltpu


def _attn_kernel(q_ref, k_ref, v_ref, rmat_ref, o_ref, *,
                 nheads, head_dim, causal, scale):
    """q/k/v/o refs: (blk, M = nheads*head_dim) f32 lane-dense VMEM tiles.
       rmat ref: (M, M) bf16 block-diagonal 0/1 'segmented sum + broadcast'."""
    H, D = nheads, head_dim

    rmat = rmat_ref[...]                    # 0/1 entries -> exact in bf16
    q = q_ref[...] * scale                  # fold 1/sqrt(D) once, full width
    k = k_ref[...]
    v = v_ref[...]

    if causal:
        # Lane index, transported below with the same roll as k: comparing the
        # transported index against the static one reproduces the tril mask
        # (key head <= query head) exactly, independent of roll convention.
        lane_idx = jax.lax.broadcasted_iota(jnp.int32, q.shape, 1).astype(jnp.float32)

    def seg_sum(p):
        # Sum of p over each D-lane head group, broadcast back across the
        # group, as one matmul on the (otherwise idle) MXU.  Exact bf16 hi/lo
        # split keeps ~f32 accuracy with two cheap native bf16 passes.
        p_hi = p.astype(jnp.bfloat16)
        p_lo = (p - p_hi.astype(jnp.float32)).astype(jnp.bfloat16)
        s = jnp.dot(p_hi, rmat, preferred_element_type=jnp.float32)
        return s + jnp.dot(p_lo, rmat, preferred_element_type=jnp.float32)

    # Pass 1: full-width scores for every head offset r.
    # NOTE: live score buffers are O(H); for nheads >> 8 this should switch to
    # an online-softmax over r to bound VMEM temporaries (not needed here).
    scores = []
    for r in range(H):
        k_r = pltpu.roll(k, shift=r * D, axis=1) if r else k
        s_r = seg_sum(q * k_r)
        if causal and r:
            j_idx = pltpu.roll(lane_idx, shift=r * D, axis=1)
            # transported (key) lane index <= static (query) lane index
            #   <=>  key head <= query head   (shift is a multiple of D)
            s_r = jnp.where(j_idx <= lane_idx, s_r, -1e30)  # exp -> exactly 0
        scores.append(s_r)

    # Numerically stable softmax over the H offsets (== reference softmax over
    # key heads, just laid out full-width), then the P @ V accumulation.
    m = scores[0]
    for s_r in scores[1:]:
        m = jnp.maximum(m, s_r)

    l = None
    acc = None
    for r in range(H):
        e_r = jnp.exp(scores[r] - m)                         # EUP
        v_r = pltpu.roll(v, shift=r * D, axis=1) if r else v
        l = e_r if l is None else l + e_r
        acc = e_r * v_r if acc is None else acc + e_r * v_r

    # Exact divide (the EUP has plenty of slack here); approx reciprocal was
    # the source of the previous numeric mismatch.
    o_ref[...] = (acc / l).astype(o_ref.dtype)


def _vmem_capacity_bytes():
    try:
        return int(pltpu.get_tpu_info().vmem_capacity_bytes)
    except Exception:
        return 64 * 1024 * 1024            # conservative (v7x per-TensorCore)


def _pick_blk(bs, bytes_per_row, budget_bytes):
    """Row tile: largest multiple of 8 that divides bs, fits the VMEM budget,
    and leaves >= 2 grid blocks (megacore) when bs is large enough.
    Returns 0 if no clean tiling exists (caller falls back to padding)."""
    max_rows = max(8, (budget_bytes // bytes_per_row) // 8 * 8)
    if bs <= max_rows and (bs < 16 or bs % 8):
        return bs                          # tiny / odd: one full-extent block
    cap = min(max_rows, max(8, (bs // 2) // 8 * 8))
    best = 0
    d = 8
    while d <= cap:
        if bs % d == 0:
            best = d
        d += 8
    if best and (best >= 256 or bs // best <= 32):
        return best
    if bs <= max_rows:
        return bs                          # single block beats many tiny ones
    return 0


def temporal_attention(q, k, v, *, nheads, causal):
    """q, k, v: (B, S, nheads*hidden) float32 -> (B, S, nheads*hidden)"""
    B, S, M = q.shape
    assert M % nheads == 0
    D = M // nheads
    BS = B * S

    # Free leading-dim merge; keep the lane-dense 2-D (BS, M) layout end to end.
    q2 = q.reshape(BS, M)
    k2 = k.reshape(BS, M)
    v2 = v.reshape(BS, M)

    # Block-diagonal "sum each D-lane head group and broadcast it back" matrix.
    head_id = jnp.arange(M, dtype=jnp.int32) // D
    rmat = (head_id[:, None] == head_id[None, :]).astype(jnp.bfloat16)

    # VMEM-aware tile selection (v7x: 64 MiB per TC, v5e/v6e: 128 MiB).
    cap = _vmem_capacity_bytes()
    vmem_limit = max(40 * 2**20, min(96 * 2**20, cap - 32 * 2**20))
    # (3 inputs + 1 output) double-buffered block buffers + full-width
    # in-kernel temporaries (scores etc.), all f32, per row:
    bytes_per_row = (8 + nheads + 12) * M * 4
    blk = _pick_blk(BS, bytes_per_row, vmem_limit - 4 * 2**20)

    padded = False
    if blk == 0:
        # Rare fallback (e.g. B*S = 8 * large prime): pad the row axis.  Costs
        # an extra HBM copy, so _pick_blk avoids it whenever a clean tiling
        # exists.  Zero padding is numerically safe (rows are independent).
        blk = max(8, min(2048, (vmem_limit - 4 * 2**20) // bytes_per_row // 8 * 8))
        BSp = -(-BS // blk) * blk
        q2 = jnp.pad(q2, ((0, BSp - BS), (0, 0)))
        k2 = jnp.pad(k2, ((0, BSp - BS), (0, 0)))
        v2 = jnp.pad(v2, ((0, BSp - BS), (0, 0)))
        padded = True

    num_blocks = q2.shape[0] // blk

    kernel = functools.partial(
        _attn_kernel,
        nheads=nheads,
        head_dim=D,
        causal=causal,
        scale=1.0 / math.sqrt(D),
    )

    row_spec = pl.BlockSpec((blk, M), lambda i: (i, 0))
    mat_spec = pl.BlockSpec((M, M), lambda i: (0, 0))   # same block every step

    out = pl.pallas_call(
        kernel,
        out_shape=jax.ShapeDtypeStruct((q2.shape[0], M), q.dtype),
        grid_spec=pltpu.PrefetchScalarGridSpec(
            num_scalar_prefetch=0,
            grid=(num_blocks,),
            in_specs=[row_spec, row_spec, row_spec, mat_spec],
            out_specs=row_spec,
        ),
        compiler_params=pltpu.CompilerParams(
            dimension_semantics=("parallel",),
            vmem_limit_bytes=vmem_limit,
        ),
    )(q2, k2, v2, rmat)

    if padded:
        out = out[:BS]
    return out.reshape(B, S, M)


def _reference(q, k, v, nheads, causal):
    """Pure-JAX mirror of the PyTorch module (high-precision matmuls)."""
    B, S, M = q.shape
    D = M // nheads
    qh = q.reshape(B, S, nheads, D)
    kh = k.reshape(B, S, nheads, D)
    vh = v.reshape(B, S, nheads, D)
    s = jnp.einsum("bshd,bsjd->bshj", qh, kh,
                   precision=jax.lax.Precision.HIGHEST) / math.sqrt(D)
    if causal:
        mask = jnp.tril(jnp.ones((nheads, nheads), dtype=bool))
        s = jnp.where(mask, s, -1e18)
    p = jax.nn.softmax(s, axis=-1)
    o = jnp.einsum("bshj,bsjd->bshd", p, vh,
                   precision=jax.lax.Precision.HIGHEST)
    return o.reshape(B, S, M)


if __name__ == "__main__":
    B, S, nheads, hidden = 2, 8, 4, 32
    M = nheads * hidden
    key = jax.random.PRNGKey(0)
    kq, kk, kv = jax.random.split(key, 3)
    q = jax.random.normal(kq, (B, S, M), dtype=jnp.float32)
    k = jax.random.normal(kk, (B, S, M), dtype=jnp.float32)
    v = jax.random.normal(kv, (B, S, M), dtype=jnp.float32)

    ok = True
    for causal in (False, True):
        out = jax.block_until_ready(
            temporal_attention(q, k, v, nheads=nheads, causal=causal))
        ref = _reference(q, k, v, nheads, causal)
        err = float(jnp.max(jnp.abs(out - ref)))
        finite = bool(jnp.all(jnp.isfinite(out)))
        if not (err <= 1e-3 and finite):
            ok = False
            print(f"MISMATCH (causal={causal}): max_abs_err={err} finite={finite}")

    if ok:
        print("KERNEL_OK")
</pallas_src>

<mosaic_0001>
module attributes {stable_mosaic.version = 11 : i64} {
  func.func @_attn_kernel(%arg0: i32, %arg1: memref<8x128xf32, #tpu.memory_space<vmem>>, %arg2: memref<8x128xf32, #tpu.memory_space<vmem>>, %arg3: memref<8x128xf32, #tpu.memory_space<vmem>>, %arg4: memref<128x128xbf16, #tpu.memory_space<vmem>>, %arg5: memref<8x128xf32, #tpu.memory_space<vmem>>) attributes {dimension_semantics = [#tpu.dimension_semantics<parallel>], iteration_bounds = array<i64: 2>, scalar_prefetch = 0 : i64, scratch_operands = 0 : i64, tpu.core_type = #tpu.core_type<tc>, window_params = [{transform_indices = @transform_0, window_bounds = array<i64: 8, 128>}, {transform_indices = @transform_1, window_bounds = array<i64: 8, 128>}, {transform_indices = @transform_2, window_bounds = array<i64: 8, 128>}, {pipeline_mode = #tpu.pipeline_mode<synchronous>, transform_indices = @transform_3, window_bounds = array<i64: 128, 128>}, {transform_indices = @transform_4, window_bounds = array<i64: 8, 128>}]} {
    %c0 = arith.constant 0 : index
    %c0_0 = arith.constant 0 : index
    %0 = vector.load %arg4[%c0, %c0_0] : memref<128x128xbf16, #tpu.memory_space<vmem>>, vector<128x128xbf16>
    %c0_1 = arith.constant 0 : index
    %c0_2 = arith.constant 0 : index
    %1 = vector.load %arg1[%c0_1, %c0_2] : memref<8x128xf32, #tpu.memory_space<vmem>>, vector<8x128xf32>
    %cst = arith.constant 0.176776692 : f32
    %2 = vector.broadcast %cst : f32 to vector<8x128xf32>
    %3 = arith.mulf %1, %2 : vector<8x128xf32>
    %c0_3 = arith.constant 0 : index
    %c0_4 = arith.constant 0 : index
    %4 = vector.load %arg2[%c0_3, %c0_4] : memref<8x128xf32, #tpu.memory_space<vmem>>, vector<8x128xf32>
    %c0_5 = arith.constant 0 : index
    %c0_6 = arith.constant 0 : index
    %5 = vector.load %arg3[%c0_5, %c0_6] : memref<8x128xf32, #tpu.memory_space<vmem>>, vector<8x128xf32>
    %6 = arith.mulf %3, %4 : vector<8x128xf32>
    %7 = arith.truncf %6 : vector<8x128xf32> to vector<8x128xbf16>
    %8 = arith.extf %7 : vector<8x128xbf16> to vector<8x128xf32>
    %9 = arith.subf %6, %8 : vector<8x128xf32>
    %10 = arith.truncf %9 : vector<8x128xf32> to vector<8x128xbf16>
    %cst_7 = arith.constant dense<0.000000e+00> : vector<8x128xf32>
    %11 = tpu.matmul %7, %0, %cst_7 {dimension_numbers = #tpu.dot_dimension_numbers<[1], [0], [0], [1], [0, 0, 1, 1], [], []>} : vector<8x128xbf16>, vector<128x128xbf16>, vector<8x128xf32> -> vector<8x128xf32>
    %cst_8 = arith.constant dense<0.000000e+00> : vector<8x128xf32>
    %12 = tpu.matmul %10, %0, %cst_8 {dimension_numbers = #tpu.dot_dimension_numbers<[1], [0], [0], [1], [0, 0, 1, 1], [], []>} : vector<8x128xbf16>, vector<128x128xbf16>, vector<8x128xf32> -> vector<8x128xf32>
    %13 = arith.addf %11, %12 : vector<8x128xf32>
    %c32_i32 = arith.constant 32 : i32
    %14 = tpu.dynamic_rotate %4 by %c32_i32 dim 1 : vector<8x128xf32>, i32 -> vector<8x128xf32>
    %15 = arith.mulf %3, %14 : vector<8x128xf32>
    %16 = arith.truncf %15 : vector<8x128xf32> to vector<8x128xbf16>
    %17 = arith.extf %16 : vector<8x128xbf16> to vector<8x128xf32>
    %18 = arith.subf %15, %17 : vector<8x128xf32>
    %19 = arith.truncf %18 : vector<8x128xf32> to vector<8x128xbf16>
    %cst_9 = arith.constant dense<0.000000e+00> : vector<8x128xf32>
    %20 = tpu.matmul %16, %0, %cst_9 {dimension_numbers = #tpu.dot_dimension_numbers<[1], [0], [0], [1], [0, 0, 1, 1], [], []>} : vector<8x128xbf16>, vector<128x128xbf16>, vector<8x128xf32> -> vector<8x128xf32>
    %cst_10 = arith.constant dense<0.000000e+00> : vector<8x128xf32>
    %21 = tpu.matmul %19, %0, %cst_10 {dimension_numbers = #tpu.dot_dimension_numbers<[1], [0], [0], [1], [0, 0, 1, 1], [], []>} : vector<8x128xbf16>, vector<128x128xbf16>, vector<8x128xf32> -> vector<8x128xf32>
    %22 = arith.addf %20, %21 : vector<8x128xf32>
    %c64_i32 = arith.constant 64 : i32
    %23 = tpu.dynamic_rotate %4 by %c64_i32 dim 1 : vector<8x128xf32>, i32 -> vector<8x128xf32>
    %24 = arith.mulf %3, %23 : vector<8x128xf32>
    %25 = arith.truncf %24 : vector<8x128xf32> to vector<8x128xbf16>
    %26 = arith.extf %25 : vector<8x128xbf16> to vector<8x128xf32>
    %27 = arith.subf %24, %26 : vector<8x128xf32>
    %28 = arith.truncf %27 : vector<8x128xf32> to vector<8x128xbf16>
    %cst_11 = arith.constant dense<0.000000e+00> : vector<8x128xf32>
    %29 = tpu.matmul %25, %0, %cst_11 {dimension_numbers = #tpu.dot_dimension_numbers<[1], [0], [0], [1], [0, 0, 1, 1], [], []>} : vector<8x128xbf16>, vector<128x128xbf16>, vector<8x128xf32> -> vector<8x128xf32>
    %cst_12 = arith.constant dense<0.000000e+00> : vector<8x128xf32>
    %30 = tpu.matmul %28, %0, %cst_12 {dimension_numbers = #tpu.dot_dimension_numbers<[1], [0], [0], [1], [0, 0, 1, 1], [], []>} : vector<8x128xbf16>, vector<128x128xbf16>, vector<8x128xf32> -> vector<8x128xf32>
    %31 = arith.addf %29, %30 : vector<8x128xf32>
    %c96_i32 = arith.constant 96 : i32
    %32 = tpu.dynamic_rotate %4 by %c96_i32 dim 1 : vector<8x128xf32>, i32 -> vector<8x128xf32>
    %33 = arith.mulf %3, %32 : vector<8x128xf32>
    %34 = arith.truncf %33 : vector<8x128xf32> to vector<8x128xbf16>
    %35 = arith.extf %34 : vector<8x128xbf16> to vector<8x128xf32>
    %36 = arith.subf %33, %35 : vector<8x128xf32>
    %37 = arith.truncf %36 : vector<8x128xf32> to vector<8x128xbf16>
    %cst_13 = arith.constant dense<0.000000e+00> : vector<8x128xf32>
    %38 = tpu.matmul %34, %0, %cst_13 {dimension_numbers = #tpu.dot_dimension_numbers<[1], [0], [0], [1], [0, 0, 1, 1], [], []>} : vector<8x128xbf16>, vector<128x128xbf16>, vector<8x128xf32> -> vector<8x128xf32>
    %cst_14 = arith.constant dense<0.000000e+00> : vector<8x128xf32>
    %39 = tpu.matmul %37, %0, %cst_14 {dimension_numbers = #tpu.dot_dimension_numbers<[1], [0], [0], [1], [0, 0, 1, 1], [], []>} : vector<8x128xbf16>, vector<128x128xbf16>, vector<8x128xf32> -> vector<8x128xf32>
    %40 = arith.addf %38, %39 : vector<8x128xf32>
    %41 = arith.maximumf %13, %22 : vector<8x128xf32>
    %42 = arith.maximumf %41, %31 : vector<8x128xf32>
    %43 = arith.maximumf %42, %40 : vector<8x128xf32>
    %44 = arith.subf %13, %43 : vector<8x128xf32>
    %45 = math.exp %44 : vector<8x128xf32>
    %46 = arith.mulf %45, %5 : vector<8x128xf32>
    %47 = arith.subf %22, %43 : vector<8x128xf32>
    %48 = math.exp %47 : vector<8x128xf32>
    %c32_i32_15 = arith.constant 32 : i32
    %49 = tpu.dynamic_rotate %5 by %c32_i32_15 dim 1 : vector<8x128xf32>, i32 -> vector<8x128xf32>
    %50 = arith.addf %45, %48 : vector<8x128xf32>
    %51 = arith.mulf %48, %49 : vector<8x128xf32>
    %52 = arith.addf %46, %51 : vector<8x128xf32>
    %53 = arith.subf %31, %43 : vector<8x128xf32>
    %54 = math.exp %53 : vector<8x128xf32>
    %c64_i32_16 = arith.constant 64 : i32
    %55 = tpu.dynamic_rotate %5 by %c64_i32_16 dim 1 : vector<8x128xf32>, i32 -> vector<8x128xf32>
    %56 = arith.addf %50, %54 : vector<8x128xf32>
    %57 = arith.mulf %54, %55 : vector<8x128xf32>
    %58 = arith.addf %52, %57 : vector<8x128xf32>
    %59 = arith.subf %40, %43 : vector<8x128xf32>
    %60 = math.exp %59 : vector<8x128xf32>
    %c96_i32_17 = arith.constant 96 : i32
    %61 = tpu.dynamic_rotate %5 by %c96_i32_17 dim 1 : vector<8x128xf32>, i32 -> vector<8x128xf32>
    %62 = arith.addf %56, %60 : vector<8x128xf32>
    %63 = arith.mulf %60, %61 : vector<8x128xf32>
    %64 = arith.addf %58, %63 : vector<8x128xf32>
    %65 = arith.divf %64, %62 : vector<8x128xf32>
    %c0_18 = arith.constant 0 : index
    %c0_19 = arith.constant 0 : index
    %66 = vector.load %arg5[%c0_18, %c0_19] : memref<8x128xf32, #tpu.memory_space<vmem>>, vector<8x128xf32>
    tpu.vector_store %arg5[%c0_18, %c0_19], %65 {strides = array<i32>} : memref<8x128xf32, #tpu.memory_space<vmem>>, vector<8x128xf32>,
    return
  }
  func.func @transform_0(%arg0: i32) -> (i32, i32) {
    %c0_i32 = arith.constant 0 : i32
    %c0_i32_0 = arith.constant 0 : i32
    return %arg0, %c0_i32 : i32, i32
  }
  func.func @transform_1(%arg0: i32) -> (i32, i32) {
    %c0_i32 = arith.constant 0 : i32
    %c0_i32_0 = arith.constant 0 : i32
    return %arg0, %c0_i32 : i32, i32
  }
  func.func @transform_2(%arg0: i32) -> (i32, i32) {
    %c0_i32 = arith.constant 0 : i32
    %c0_i32_0 = arith.constant 0 : i32
    return %arg0, %c0_i32 : i32, i32
  }
  func.func @transform_3(%arg0: i32) -> (i32, i32) {
    %c0_i32 = arith.constant 0 : i32
    %c0_i32_0 = arith.constant 0 : i32
    %c0_i32_1 = arith.constant 0 : i32
    return %c0_i32, %c0_i32_0 : i32, i32
  }
  func.func @transform_4(%arg0: i32) -> (i32, i32) {
    %c0_i32 = arith.constant 0 : i32
    %c0_i32_0 = arith.constant 0 : i32
    return %arg0, %c0_i32 : i32, i32
  }
}

</mosaic_0001>

<bundles_post_ra>
// kernel: tpu_custom_call.1
= control target key start
LH: loop header
LB: loop body
LE: loop exit
PB: predicated region body
PF: predicated region fallthrough
CT: control target
= control target key end

     0   :  { %s1948_s0 = inlined_call_operand.hbm [shape: f32[16,128], index: 0, kind: input, shape index: {}]   ;;  %s1949_s1 = inlined_call_operand.hbm [shape: f32[16,128], index: 1, kind: input, shape index: {}]   ;;  %s1950_s2 = inlined_call_operand.hbm [shape: f32[16,128], index: 2, kind: input, shape index: {}]   ;;  %s1951_s3 = inlined_call_operand.hbm [shape: bf16[128,128], index: 3, kind: input, shape index: {}]   ;;  %s1952_s4 = inlined_call_operand.hbm [shape: f32[16,128], index: 4, kind: output, shape index: {}]  }
   0x1   :  { %1968 = sst [smem:[#allocation20_spill]] %s1949_s1 }
   0x2   :  { %9 = vsyncpa [#allocation3], 0 }
   0x3   :  { %11 = vsyncpa [#allocation3 + $0x1], 0 }
   0x4   :  { %12 = vsyncpa [#allocation6], 0 }
   0x5   :  { %14 = vsyncpa [#allocation6 + $0x1], 0 }
   0x6   :  { %15 = vsyncpa [#allocation9], 0 }
   0x7   :  { %16 = vsyncpa [#allocation4], 0 }
   0x8   :  { %18 = vsyncpa [#allocation4 + $0x1], 0  ;;  %s1484_s15 = smov 0   ;;  %s1486_s16 = smov 0  }
   0x9   :  { %s1488_s17 = smov 0   ;;  %s1490_s18 = smov 0  }
   0xa LB: > { %1969 = sst [smem:[#allocation15_spill]] %s1433_s15  ;;  %s1505_s19 = sadd.s32 1, %s1445_s18   ;;  %s1445_s18 = sphi %s1490_s18, %s1997_s18   ;;  %s1441_s17 = sphi %s1488_s17, %s2001_s17   ;;  %s1437_s16 = sphi %s1486_s16, %s2000_s16   ;;  %s1433_s15 = sphi %s1484_s15, %s1999_s15  }
   0xb   : > { %1970 = sst [smem:[#allocation16_spill]] %s1445_s18  ;;  %s31_s20 = sadd.s32 1, %s1441_s17 }
   0xc   : > { %1971 = sst [smem:[#allocation17_spill]] %s1505_s19  ;;  %s28_s21 = ssub.s32 %s1445_s18, %s1505_s19 }
   0xd   : > { %p1953_p0 = scmp.ne.s32.totalorder %s1441_s17, %s1437_s16  ;;  %p29_p1 = scmp.eq.s32.totalorder %s28_s21, 0 }
   0xe   : > { %p39_p2 = scmp.eq.s32.totalorder %s1445_s18, 0  ;;  %p1192_p4 = scmp.lt.s32.totalorder %s1445_s18, 2 }
   0xf   : > { %s1516_s22 = scalar_select %p29_p1, %s1441_s17, %s31_s20  }
  0x10   : > { %p40_p5 = por %p39_p2, %p1953_p0  ;;  %s1954_s23 = sand.u32 1, %s1441_s17  }
  0x11   : > { %1972 = sst [smem:[#allocation18_spill]] %s1516_s22  ;;  %s1524_s24 = sshll.u32 %s1954_s23, 3 }
  0x12   : > { %s1527_s25 = sshll.u32 %s1445_s18, 7  ;;  %p1529_p6 = pnand %p1192_p4, %p40_p5 }
  0x13   : > { %s198_s27 = sand.u32 1, %s1445_s18   ;;  %s1974_s1 = sld [smem:[#allocation20_spill]] }
  0x14   : > { %s1973_s26 = scalar_select %p1529_p6, 1, 0 }
  0x15   : > { %s202_s5 = scalar_lea.vmem [#allocation5], %s1524_s24  ;;  %s1543_s7 = scalar_lea.sflag [#allocation6], %s198_s27 }
  0x16   : > { %s209_s6 = sshll.u32 %s202_s5, 4  ;;  %p1549_p8 = pneg %p1529_p6  ;;  %s1541_s6 = int_to_ptr.vmem [resolvable:$true] %s209_s6 }
  0x18   : > { %s1975_s9 = scalar_select %p1549_p8, 1, 0 }
  0x19   : > { %s1538_s30 = scalar_lea.hbm %s1974_s1, %s1527_s25  ;;  %s1258_s12 = scalar_lea.hbm %s1974_s1, 256 }
  0x1a   : > { %s1253_s8 = scalar_lea.hbm %s1538_s30, 128  ;;  %p1259_p11 = scmp.lt.u32.totalorder %s1538_s30, %s1974_s1 }
  0x1b   : > { %p1254_p7 = scmp.ne.s32.totalorder %s1538_s30, %s1253_s8  ;;  %p1260_p12 = scmp.lt.u32.totalorder %s1258_s12, %s1253_s8 }
  0x1c   : > { %p1262_p1 = scmp.lt.u32.totalorder %s1253_s8, %s1538_s30 }
  0x1d   : > { %p1256_p9 = pnand %p1549_p8, %p1254_p7  ;;  %p1261_p13 = por %p1260_p12, %p1259_p11 }
  0x1f   : > { %p1257_p10 = pneg %p1256_p9  ;;  %p1263_p2 = por %p1262_p1, %p1261_p13 }
  0x21   : > { %p1264_p4 = pnand %p1263_p2, %p1257_p10 }
  0x23   : > { %1267 = shalt.err (!%p1264_p4)
}
  0x24   : > { %s1268_s20 = scalar_lea.vmem %s1541_s6, 128  ;;  %s1447_s21 = smov [#allocation5]  }
  0x25   : > { %p1269_p5 = scmp.ne.s32.totalorder %s1541_s6, %s1268_s20  ;;  %s1273_s27 = sshll.u32 %s1447_s21, 4  ;;  %s1274_s27 = int_to_ptr.vmem [resolvable:$false] %s1273_s27 }
  0x26   : > { %s1275_s28 = scalar_lea.vmem %s1274_s27, 256  ;;  %p1276_p3 = scmp.lt.s32.totalorder %s1541_s6, %s1274_s27 }
  0x27   : > { %p1271_p7 = pnand %p1269_p5, %p1549_p8  ;;  %p1277_p0 = scmp.lt.s32.totalorder %s1275_s28, %s1268_s20 }
  0x29   : > { %p1272_p9 = pneg %p1271_p7  ;;  %p1278_p11 = por %p1277_p0, %p1276_p3 }
  0x2b   : > { %p1279_p12 = pnand %p1278_p11, %p1272_p9 }
  0x2d   : > { %1282 = shalt.err (!%p1279_p12)
}
  0x2e   : > { %1183 = dma.hbm_to_vmem [thread:$0]  (!%p1529_p6), %s1538_s30, 128, %s1541_s6, %s1543_s7  }
  0x2f   : > { %s1574_s29 = sadd.s32 4294967295, %s1445_s18   ;;  %s885_s5 = sadd.s32 4294967294, %s1445_s18  }
  0x30   : > { %p44_p0 = scmp.ne.s32.totalorder %s1437_s16, %s1433_s15  ;;  %p1958_p3 = scmp.eq.s32.totalorder %s1574_s29, 0 }
  0x31   : > { %p141_p10 = scmp.eq.s32.totalorder %s1574_s29, 1  ;;  %p147_p13 = scmp.eq.s32.totalorder %s885_s5, 1 }
  0x32   : > { %p1583_p1 = por %p1958_p3, %p44_p0  ;;  %p886_p2 = scmp.ge.s32.totalorder %s1445_s18, 1 }
  0x33   : > { %p1977_p4 = scmp.ne.s32.totalorder %s1441_s17, %s1437_s16  ;;  %p1595_p7 = por %p147_p13, %p44_p0 }
  0x34   : > { %s1976_s8 = scalar_select %p1583_p1, 1, 0 }
  0x35   : > { %p1591_p5 = por %p141_p10, %p1977_p4  ;;  %p154_p9 = scmp.lt.s32.totalorder %s1445_s18, 3 }
  0x36   : > { %s1979_s6 = scalar_select %p1595_p7, 1, 0 }
  0x37   : > { %s1978_s30 = scalar_select %p1591_p5, 1, 0 }
  0x38   : > { %1980 = sst [smem:[#allocation19_spill]] %s1979_s6  ;;  %p1600_p11 = pnand %p886_p2, %p154_p9 }
  0x39   : > { %s1448_s11 = smov [#allocation8]   ;;  %s1612_s20 = scalar_lea.hbm %s1948_s0, %s1527_s25 }
  0x3a   : > { %s1981_s10 = scalar_select %p1600_p11, 1, 0 }
  0x3b   : > { %s166_s12 = sshll.u32 %s1448_s11, 4  ;;  %p1173_p12 = pneg %p1600_p11  ;;  %s1604_s12 = int_to_ptr.vmem [resolvable:$true] %s166_s12 }
  0x3c   : > { %s184_s27 = scalar_lea.vmem [#allocation2], %s1524_s24  ;;  %s1627_s23 = scalar_lea.hbm %s1950_s2, %s1527_s25 }
  0x3d   : > { %p1616_p0 = pnand %p1173_p12, %p1958_p3  ;;  %s191_s28 = sshll.u32 %s184_s27, 4  ;;  %s1621_s28 = int_to_ptr.vmem [resolvable:$true] %s191_s28 }
  0x3e   : > { %s1283_s13 = scalar_lea.hbm %s1951_s3, 1024 }
  0x3f   : > { %p1284_p10 = scmp.ne.s32.totalorder %s1951_s3, %s1283_s13  ;;  %p1285_p13 = pneg %p1616_p0 }
  0x40   : > { %p1290_p9 = scmp.lt.u32.totalorder %s1283_s13, %s1951_s3 }
  0x41   : > { %p1286_p2 = pnand %p1285_p13, %p1284_p10 }
  0x43   : > { %p1287_p4 = pneg %p1286_p2 }
  0x45   : > { %p1292_p12 = pnand %p1290_p9, %p1287_p4 }
  0x47   : > { %1295 = shalt.err (!%p1292_p12)
}
  0x48   : > { %s1296_s25 = scalar_lea.vmem %s1604_s12, 1024  ;;  %p1304_p1 = scmp.lt.s32.totalorder %s1604_s12, %s1604_s12 }
  0x49   : > { %p1297_p3 = scmp.ne.s32.totalorder %s1604_s12, %s1296_s25  ;;  %p1305_p11 = scmp.lt.s32.totalorder %s1296_s25, %s1296_s25 }
  0x4b   : > { %p1299_p7 = pnand %p1297_p3, %p1285_p13  ;;  %p1306_p6 = por %p1305_p11, %p1304_p1 }
  0x4d   : > { %p1300_p5 = pneg %p1299_p7 }
  0x4f   : > { %p1307_p8 = pnand %p1306_p6, %p1300_p5 }
  0x51   : > { %1310 = shalt.err (!%p1307_p8)
}
  0x52   : > { %s1449_s1 = smov 64   ;;  %s1450_s18 = smov 4  }
  0x53   : > { %1176 = dma.hbm_to_vmem [thread:$0]  (!%p1616_p0), %s1951_s3, 1024, %s1604_s12, [#allocation9], %s1449_s1, %s1449_s1, %s1450_s18  }
  0x54   : > { %s1983_s5 = sand.u32 1, %s1441_s17   ;;  %s1311_s13 = scalar_lea.hbm %s1612_s20, 128 }
  0x55   : > { %s181_s11 = scalar_lea.sflag [#allocation3], %s1983_s5  ;;  %p1312_p6 = scmp.ne.s32.totalorder %s1612_s20, %s1311_s13 }
  0x56   : > { %p1984_p8 = scmp.ne.s32.totalorder %s1975_s9, 0  ;;  %s1316_s25 = scalar_lea.hbm %s1948_s0, 256 }
  0x57   : > { %p1317_p5 = scmp.lt.u32.totalorder %s1612_s20, %s1948_s0  ;;  %p1318_p7 = scmp.lt.u32.totalorder %s1316_s25, %s1311_s13 }
  0x58   : > { %p1314_p3 = pnand %p1312_p6, %p1984_p8  ;;  %p1320_p10 = scmp.lt.u32.totalorder %s1311_s13, %s1612_s20 }
  0x59   : > { %p1319_p11 = por %p1318_p7, %p1317_p5 }
  0x5a   : > { %p1315_p1 = pneg %p1314_p3 }
  0x5b   : > { %p1321_p13 = por %p1320_p10, %p1319_p11 }
  0x5d   : > { %p1322_p0 = pnand %p1321_p13, %p1315_p1 }
  0x5f   : > { %1325 = shalt.err (!%p1322_p0)
}
  0x60   : > { %s1326_s12 = scalar_lea.vmem %s1621_s28, 128  ;;  %s1451_s21 = smov [#allocation2]  }
  0x61   : > { %p1327_p2 = scmp.ne.s32.totalorder %s1621_s28, %s1326_s12  ;;  %s1331_s1 = sshll.u32 %s1451_s21, 4  ;;  %s1332_s1 = int_to_ptr.vmem [resolvable:$false] %s1331_s1 }
  0x62   : > { %s1333_s15 = scalar_lea.vmem %s1332_s1, 256  ;;  %p1334_p12 = scmp.lt.s32.totalorder %s1621_s28, %s1332_s1 }
  0x63   : > { %p1329_p4 = pnand %p1327_p2, %p1984_p8  ;;  %p1335_p6 = scmp.lt.s32.totalorder %s1333_s15, %s1326_s12 }
  0x65   : > { %p1330_p9 = pneg %p1329_p4  ;;  %p1336_p3 = por %p1335_p6, %p1334_p12 }
  0x67   : > { %p1337_p5 = pnand %p1336_p3, %p1330_p9 }
  0x69   : > { %1340 = shalt.err (!%p1337_p5)
}
  0x6a   : > { %p1985_p1 = scmp.ne.s32.totalorder %s1973_s26, 0  ;;  %s220_s6 = scalar_lea.vmem [#allocation7], %s1524_s24 }
  0x6b   : > { %s227_s18 = sshll.u32 %s220_s6, 4  ;;  %s1341_s19 = scalar_lea.hbm %s1627_s23, 128  ;;  %s228_s18 = int_to_ptr.vmem [resolvable:$true] %s227_s18 }
  0x6c   : > { %1180 = dma.hbm_to_vmem [thread:$0]  (!%p1985_p1), %s1612_s20, 128, %s1621_s28, %s181_s11  }
  0x6d   : > { %p1342_p7 = scmp.ne.s32.totalorder %s1627_s23, %s1341_s19  ;;  %s1346_s13 = scalar_lea.hbm %s1950_s2, 256 }
  0x6e   : > { %p1347_p13 = scmp.lt.u32.totalorder %s1627_s23, %s1950_s2  ;;  %p1348_p0 = scmp.lt.u32.totalorder %s1346_s13, %s1341_s19 }
  0x6f   : > { %p1344_p11 = pnand %p1342_p7, %p1984_p8  ;;  %p1350_p4 = scmp.lt.u32.totalorder %s1341_s19, %s1627_s23 }
  0x70   : > { %p1349_p2 = por %p1348_p0, %p1347_p13 }
  0x71   : > { %p1345_p10 = pneg %p1344_p11 }
  0x72   : > { %p1351_p9 = por %p1350_p4, %p1349_p2 }
  0x74   : > { %p1352_p12 = pnand %p1351_p9, %p1345_p10 }
  0x76   : > { %1355 = shalt.err (!%p1352_p12)
}
  0x77   : > { %s1356_s24 = scalar_lea.vmem %s228_s18, 128  ;;  %s1452_s20 = smov [#allocation7]  }
  0x78   : > { %p1357_p6 = scmp.ne.s32.totalorder %s228_s18, %s1356_s24  ;;  %s1361_s28 = sshll.u32 %s1452_s20, 4  ;;  %s1362_s28 = int_to_ptr.vmem [resolvable:$false] %s1361_s28 }
  0x79   : > { %s1363_s11 = scalar_lea.vmem %s1362_s28, 256  ;;  %p1364_p7 = scmp.lt.s32.totalorder %s228_s18, %s1362_s28 }
  0x7a   : > { %p1359_p3 = pnand %p1357_p6, %p1984_p8  ;;  %p1365_p11 = scmp.lt.s32.totalorder %s1363_s11, %s1356_s24 }
  0x7c   : > { %p1360_p5 = pneg %p1359_p3  ;;  %p1366_p1 = por %p1365_p11, %p1364_p7 }
  0x7e   : > { %p1367_p0 = pnand %p1366_p1, %p1360_p5 }
  0x80   : > { %1370 = shalt.err (!%p1367_p0)
}
  0x81   : > { %p1986_p13 = scmp.ne.s32.totalorder %s1973_s26, 0  ;;  %p1987_p10 = scmp.ne.s32.totalorder %s1981_s10, 0 }
  0x82   : > { %s1695_s9 = sand.u32 (!%p1987_p10), 1, %s1437_s16   ;;  %p1988_p8 = scmp.ne.s32.totalorder (!%p1987_p10), %s1976_s8, 0 }
  0x83   : > { %1186 = dma.hbm_to_vmem [thread:$0]  (!%p1986_p13), %s1627_s23, 128, %s228_s18, %s1543_s7  }
  0x84   : > { %236 = sbr.rel (%p1987_p10) target bundleno = 633 (0x279), region = 36  ;;  %s1698_s25 = sshll.u32 (!%p1987_p10), %s1695_s9, 3 }
  0x85   : > { %s239_s12 = scalar_lea.sflag (!%p1987_p10), [#allocation3], %s1695_s9  ;;  %s242_s21 = scalar_lea.vmem (!%p1987_p10), [#allocation2], %s1698_s25 }
  0x8b   : > { %1416 = dma.done.wait (%p1988_p8), %s239_s12, 128  }
  0x8c   : > { %1418 = vsyncadd (%p1988_p8), %s239_s12, 4294967168  ;;  %s247_s23 = sand.u32 1, %s1574_s29   ;;  %s251_s7 = scalar_lea.vmem [#allocation5], %s1698_s25 }
  0x8d   : > { %s248_s26 = scalar_lea.sflag [#allocation6], %s247_s23 }
  0x8e   : > { %1420 = dma.done.wait (%p1988_p8), %s248_s26, 256  }
  0x8f   : > { %1422 = vsyncadd (%p1988_p8), %s248_s26, 4294967040  ;;  %s260_s10 = scalar_lea.vmem [#allocation7], %s1698_s25  ;;  %p1989_p1 = scmp.eq.s32.totalorder %s1574_s29, 0 }
  0x91   : > { %1424 = dma.done.wait (%p1989_p1), [#allocation9], 1024   ;;  %p1990_p2 = pmov %p1989_p1 }
  0x92   : > { %v1453_v0 = vmov 0.0   ;;  %vm1454_vm0 = vmmov 0   ;;  %v318_v1 = vld [vmem:[%s251_s7] sm:$0xff]  ;;  %s1455_s8 = smov 32   ;;  %s1456_s1 = smov 96   ;;  %v1735_v4 = vld [vmem:[#allocation8 + $0x10] sm:$0xff]  }
  0x93   : > { %1426 = vsyncadd (%p1990_p2), [#allocation9], 4294966272  ;;  %985 = vmatprep.subr.bf16.mxu0 %v1453_v0  ;;  %1001 = vmatprep.mubr.msk.bf16.mxu0 %vm1454_vm0, %v1453_v0  ;;  %v1724_v2 = vld [vmem:[#allocation8] sm:$0xff]   ;;  %v1728_v3 = vld [vmem:[#allocation8 + $0x8] sm:$0xff]   ;;  %s1457_s15 = smov 64   ;;  %s910_s6 = sshll.u32 %s1574_s29, 7 }
  0x94   : > { %1025 = vmatprep.subr.bf16.mxu1 %v1453_v0  ;;  %1041 = vmatprep.mubr.msk.bf16.mxu1 %vm1454_vm0, %v1453_v0  ;;  %v316_v5 = vld [vmem:[%s242_s21] sm:$0xff]  ;;  %v1752_v9 = vld [vmem:[#allocation8 + $0x20] sm:$0xff]   ;;  %v1758_v11 = vld [vmem:[#allocation8 + $0x28] sm:$0xff]   ;;  %s298_s18 = scalar_lea.vmem [#allocation10], %s1698_s25  ;;  %s1904_s13 = scalar_lea.hbm %s1952_s4, %s910_s6 }
  0x95   : > { %453 = vrot.lane.b32.xlu0 %v318_v1, %s1455_s8  ;;  %627 = vrot.lane.b32.xlu1 %v318_v1, %s1456_s1  ;;  %v1742_v6 = vmul.f32 0.17677669, %v316_v5  ;;  %v1745_v7 = vld [vmem:[#allocation8 + $0x18] sm:$0xff]   ;;  %v1764_v13 = vld [vmem:[#allocation8 + $0x30] sm:$0xff]   ;;  %s762_s19 = sshll.u32 %s298_s18, 4  ;;  %s749_s14 = scalar_lea.sflag [#allocation4], %s1695_s9  ;;  %s1906_s19 = int_to_ptr.vmem [resolvable:$true] %s762_s19 }
  0x96   : > { %986 = vmatpush3.bf16.msra.mxu0 %v1724_v2  ;;  %1026 = vmatpush3.bf16.msra.mxu1 %v1724_v2  ;;  %v1770_v15 = vld [vmem:[#allocation8 + $0x38] sm:$0xff]   ;;  %s1371_s27 = scalar_lea.vmem %s1906_s19, 128  ;;  %p1991_p9 = scmp.ne.s32.totalorder %s1978_s30, 0 }
  0x97   : > { %987 = vmatprep.subr.bf16.mxu0 %v1453_v0  ;;  %1027 = vmatprep.subr.bf16.mxu1 %v1453_v0  ;;  %v320_v8 = vmul.f32 %v318_v1, %v1742_v6  ;;  %v1815_v17 = vld [vmem:[%s260_s10] sm:$0xff]  ;;  %p1372_p4 = scmp.ne.s32.totalorder %s1906_s19, %s1371_s27  ;;  %s1458_s29 = smov [#allocation10]  }
  0x98   : > { %s1375_s24 = sshll.u32 %s1458_s29, 4  ;;  %s1376_s24 = int_to_ptr.vmem [resolvable:$false] %s1375_s24 }
  0x99   : > { %540 = vrot.lane.b32.xlu0 %v318_v1, %s1457_s15  ;;  %v321_v10 = vpack.c.bf16 %v320_v8, %v320_v8  ;;  %724 = vrot.lane.b32.xlu1 %v1815_v17, %s1455_s8  ;;  %p1373_p12 = pnand %p1372_p4, %p1991_p9  ;;  %s1377_s20 = scalar_lea.vmem %s1376_s24, 256 }
  0x9a   : > { %988 = vmatpush3.bf16.msra.mxu0 %v1728_v3  ;;  %1028 = vmatpush3.bf16.msra.mxu1 %v1728_v3  ;;  %p1378_p3 = scmp.lt.s32.totalorder %s1906_s19, %s1376_s24  ;;  %p1379_p5 = scmp.lt.s32.totalorder %s1377_s20, %s1371_s27 }
  0x9b   : > { %989 = vmatprep.subr.bf16.mxu0 %v1453_v0  ;;  %1029 = vmatprep.subr.bf16.mxu1 %v1453_v0  ;;  %v322_v12 = vunpack.c.l.bf16 %v321_v10  ;;  %p1374_p6 = pneg %p1373_p12 }
  0x9c   : > { %p1380_p7 = por %p1379_p5, %p1378_p3 }
  0x9d   : > { %v323_v14 = vsub.f32 %v320_v8, %v322_v12  ;;  %732 = vrot.lane.b32.xlu0 %v1815_v17, %s1457_s15  ;;  %740 = vrot.lane.b32.xlu1 %v1815_v17, %s1456_s1 }
  0x9e   : > { %990 = vmatpush3.bf16.msra.mxu0 %v1735_v4  ;;  %1030 = vmatpush3.bf16.msra.mxu1 %v1735_v4  ;;  %p1381_p11 = pnand %p1380_p7, %p1374_p6 }
  0x9f   : > { %991 = vmatprep.subr.bf16.mxu0 %v1453_v0  ;;  %1031 = vmatprep.subr.bf16.mxu1 %v1453_v0  ;;  %v324_v16 = vpack.c.bf16 %v323_v14, %v323_v14 }
  0xa2   : > { %992 = vmatpush3.bf16.msra.mxu0 %v1745_v7  ;;  %1032 = vmatpush3.bf16.msra.mxu1 %v1745_v7 }
  0xa3   : > { %993 = vmatprep.subr.bf16.mxu0 %v1453_v0  ;;  %1033 = vmatprep.subr.bf16.mxu1 %v1453_v0 }
  0xa6   : > { %994 = vmatpush3.bf16.msra.mxu0 %v1752_v9  ;;  %1034 = vmatpush3.bf16.msra.mxu1 %v1752_v9 }
  0xa7   : > { %995 = vmatprep.subr.bf16.mxu0 %v1453_v0  ;;  %1035 = vmatprep.subr.bf16.mxu1 %v1453_v0 }
  0xaa   : > { %996 = vmatpush3.bf16.msra.mxu0 %v1758_v11  ;;  %1036 = vmatpush3.bf16.msra.mxu1 %v1758_v11 }
  0xab   : > { %997 = vmatprep.subr.bf16.mxu0 %v1453_v0  ;;  %1037 = vmatprep.subr.bf16.mxu1 %v1453_v0 }
  0xae   : > { %998 = vmatpush3.bf16.msra.mxu0 %v1764_v13  ;;  %1038 = vmatpush3.bf16.msra.mxu1 %v1764_v13 }
  0xaf   : > { %999 = vmatprep.subr.bf16.mxu0 %v1453_v0  ;;  %1039 = vmatprep.subr.bf16.mxu1 %v1453_v0 }
  0xb2   : > { %1000 = vmatpush3.bf16.msra.mxu0 %v1770_v15  ;;  %1040 = vmatpush3.bf16.msra.mxu1 %v1770_v15 }
  0xb3   : > { %1005 = vmatprep.subr.bf16.mxu0 %v1453_v0  ;;  %1045 = vmatprep.subr.bf16.mxu1 %v1453_v0 }
  0xb5   : > { %1002 = vmatmul.mubr.bf16.vlgmr.msra.gmra.mrb[0].mxu0 %v324_v16 }
  0xb6   : > { %1006 = vmatpush3.bf16.msra.mxu0 %v1724_v2  ;;  %1021 = vmatprep.mubr.msk.bf16.mxu0 %vm1454_vm0, %v1453_v0 }
  0xb7   : > { %1007 = vmatprep.subr.bf16.mxu0 %v1453_v0 }
  0xba   : > { %1008 = vmatpush3.bf16.msra.mxu0 %v1728_v3 }
  0xbb   : > { %1009 = vmatprep.subr.bf16.mxu0 %v1453_v0 }
  0xbe   : > { %1010 = vmatpush3.bf16.msra.mxu0 %v1735_v4 }
  0xbf   : > { %1011 = vmatprep.subr.bf16.mxu0 %v1453_v0 }
  0xc2   : > { %1012 = vmatpush3.bf16.msra.mxu0 %v1745_v7 }
  0xc3   : > { %1013 = vmatprep.subr.bf16.mxu0 %v1453_v0 }
  0xc6   : > { %1014 = vmatpush3.bf16.msra.mxu0 %v1752_v9 }
  0xc7   : > { %1015 = vmatprep.subr.bf16.mxu0 %v1453_v0 }
  0xca   : > { %1016 = vmatpush3.bf16.msra.mxu0 %v1758_v11 }
  0xcb   : > { %1017 = vmatprep.subr.bf16.mxu0 %v1453_v0 }
  0xce   : > { %1018 = vmatpush3.bf16.msra.mxu0 %v1764_v13 }
  0xcf   : > { %1019 = vmatprep.subr.bf16.mxu0 %v1453_v0 }
  0xd2   : > { %1020 = vmatpush3.bf16.msra.mxu0 %v1770_v15 }
  0xd3   : > { %1065 = vmatprep.subr.bf16.mxu0 %v1453_v0 }
  0xd5   : > { %1022 = vmatmul.mubr.bf16.vlgmr.msra.gmra.mrb[0].mxu0 %v321_v10 }
  0xd6   : > { %1066 = vmatpush3.bf16.msra.mxu0 %v1724_v2  ;;  %1081 = vmatprep.mubr.msk.bf16.mxu0 %vm1454_vm0, %v1453_v0 }
  0xd7   : > { %1067 = vmatprep.subr.bf16.mxu0 %v1453_v0 }
  0xda   : > { %1068 = vmatpush3.bf16.msra.mxu0 %v1728_v3 }
  0xdb   : > { %1069 = vmatprep.subr.bf16.mxu0 %v1453_v0 }
  0xde   : > { %1070 = vmatpush3.bf16.msra.mxu0 %v1735_v4 }
  0xdf   : > { %1071 = vmatprep.subr.bf16.mxu0 %v1453_v0 }
  0xe2   : > { %1072 = vmatpush3.bf16.msra.mxu0 %v1745_v7 }
  0xe3   : > { %1073 = vmatprep.subr.bf16.mxu0 %v1453_v0 }
  0xe6   : > { %1074 = vmatpush3.bf16.msra.mxu0 %v1752_v9 }
  0xe7   : > { %1075 = vmatprep.subr.bf16.mxu0 %v1453_v0 }
  0xea   : > { %1076 = vmatpush3.bf16.msra.mxu0 %v1758_v11 }
  0xeb   : > { %1077 = vmatprep.subr.bf16.mxu0 %v1453_v0 }
  0xee   : > { %1078 = vmatpush3.bf16.msra.mxu0 %v1764_v13 }
  0xef   : > { %1079 = vmatprep.subr.bf16.mxu0 %v1453_v0 }
  0xf2   : > { %1080 = vmatpush3.bf16.msra.mxu0 %v1770_v15 }
  0xf3   : > { %1085 = vmatprep.subr.bf16.mxu0 %v1453_v0 }
 0x107   : > { %v454_v18 = vpop.permute.xlu0 %453  ;;  %v628_v30 = vpop.permute.xlu1 %627 }
 0x108   : > { %v455_v19 = vmul.f32 %v454_v18, %v1742_v6  ;;  %v629_v31 = vmul.f32 %v628_v30, %v1742_v6 }
 0x10a   : > { %v456_v20 = vpack.c.bf16 %v455_v19, %v455_v19  ;;  %v630_v32 = vpack.c.bf16 %v629_v31, %v629_v31 }
 0x10b   : > { %v541_v21 = vpop.permute.xlu0 %540  ;;  %v725_v63 = vpop.permute.xlu1 %724 }
 0x10c   : > { %v457_v22 = vunpack.c.l.bf16 %v456_v20  ;;  %v542_v23 = vmul.f32 %v541_v21, %v1742_v6  ;;  %v631_v33 = vunpack.c.l.bf16 %v630_v32 }
 0x10e   : > { %v458_v24 = vsub.f32 %v455_v19, %v457_v22  ;;  %v543_v25 = vpack.c.bf16 %v542_v23, %v542_v23  ;;  %v632_v34 = vsub.f32 %v629_v31, %v631_v33 }
 0x10f   : > { %v741_v8 = vpop.permute.xlu1 %740 }
 0x110   : > { %v459_v26 = vpack.c.bf16 %v458_v24, %v458_v24  ;;  %v544_v27 = vunpack.c.l.bf16 %v543_v25  ;;  %v633_v35 = vpack.c.bf16 %v632_v34, %v632_v34 }
 0x112   : > { %v545_v28 = vsub.f32 %v542_v23, %v544_v27  ;;  %1042 = vmatmul.mubr.bf16.vlgmr.msra.gmra.mrb[0].mxu1 %v459_v26 }
 0x113   : > { %1046 = vmatpush3.bf16.msra.mxu1 %v1724_v2  ;;  %1061 = vmatprep.mubr.msk.bf16.mxu1 %vm1454_vm0, %v1453_v0 }
 0x114   : > { %v546_v29 = vpack.c.bf16 %v545_v28, %v545_v28  ;;  %1047 = vmatprep.subr.bf16.mxu1 %v1453_v0 }
 0x116   : > { %1082 = vmatmul.mubr.bf16.vlgmr.msra.gmra.mrb[4].mxu0 %v546_v29 }
 0x117   : > { %1048 = vmatpush3.bf16.msra.mxu1 %v1728_v3  ;;  %1086 = vmatpush3.bf16.msra.mxu0 %v1724_v2 }
 0x118   : > { %1049 = vmatprep.subr.bf16.mxu1 %v1453_v0  ;;  %1087 = vmatprep.subr.bf16.mxu0 %v1453_v0 }
 0x119   : > { %1101 = vmatprep.mubr.msk.bf16.mxu0 %vm1454_vm0, %v1453_v0 }
 0x11b   : > { %1050 = vmatpush3.bf16.msra.mxu1 %v1735_v4  ;;  %1088 = vmatpush3.bf16.msra.mxu0 %v1728_v3 }
 0x11c   : > { %1051 = vmatprep.subr.bf16.mxu1 %v1453_v0  ;;  %1089 = vmatprep.subr.bf16.mxu0 %v1453_v0 }
 0x11f   : > { %1052 = vmatpush3.bf16.msra.mxu1 %v1745_v7  ;;  %1090 = vmatpush3.bf16.msra.mxu0 %v1735_v4 }
 0x120   : > { %1053 = vmatprep.subr.bf16.mxu1 %v1453_v0  ;;  %1091 = vmatprep.subr.bf16.mxu0 %v1453_v0 }
 0x123   : > { %1054 = vmatpush3.bf16.msra.mxu1 %v1752_v9  ;;  %1092 = vmatpush3.bf16.msra.mxu0 %v1745_v7 }
 0x124   : > { %1055 = vmatprep.subr.bf16.mxu1 %v1453_v0  ;;  %1093 = vmatprep.subr.bf16.mxu0 %v1453_v0 }
 0x127   : > { %1056 = vmatpush3.bf16.msra.mxu1 %v1758_v11  ;;  %1094 = vmatpush3.bf16.msra.mxu0 %v1752_v9 }
 0x128   : > { %1057 = vmatprep.subr.bf16.mxu1 %v1453_v0  ;;  %1095 = vmatprep.subr.bf16.mxu0 %v1453_v0 }
 0x12b   : > { %1058 = vmatpush3.bf16.msra.mxu1 %v1764_v13  ;;  %1096 = vmatpush3.bf16.msra.mxu0 %v1758_v11 }
 0x12c   : > { %1059 = vmatprep.subr.bf16.mxu1 %v1453_v0  ;;  %1097 = vmatprep.subr.bf16.mxu0 %v1453_v0 }
 0x12f   : > { %1060 = vmatpush3.bf16.msra.mxu1 %v1770_v15  ;;  %1098 = vmatpush3.bf16.msra.mxu0 %v1764_v13 }
 0x130   : > { %1099 = vmatprep.subr.bf16.mxu0 %v1453_v0  ;;  %1105 = vmatprep.subr.bf16.mxu1 %v1453_v0 }
 0x132   : > { %1062 = vmatmul.mubr.bf16.vlgmr.msra.gmra.mrb[0].mxu1 %v456_v20 }
 0x133   : > { %1100 = vmatpush3.bf16.msra.mxu0 %v1770_v15  ;;  %1106 = vmatpush3.bf16.msra.mxu1 %v1724_v2 }
 0x134   : > { %1107 = vmatprep.subr.bf16.mxu1 %v1453_v0  ;;  %1121 = vmatprep.mubr.msk.bf16.mxu1 %vm1454_vm0, %v1453_v0 }
 0x136   : > { %1102 = vmatmul.mubr.bf16.vlgmr.msra.gmra.mrb[4].mxu0 %v543_v25 }
 0x137   : > { %1108 = vmatpush3.bf16.msra.mxu1 %v1728_v3 }
 0x138   : > { %1109 = vmatprep.subr.bf16.mxu1 %v1453_v0 }
 0x13b   : > { %1110 = vmatpush3.bf16.msra.mxu1 %v1735_v4 }
 0x13c   : > { %1111 = vmatprep.subr.bf16.mxu1 %v1453_v0 }
 0x13f   : > { %1112 = vmatpush3.bf16.msra.mxu1 %v1745_v7 }
 0x140   : > { %1113 = vmatprep.subr.bf16.mxu1 %v1453_v0 }
 0x143   : > { %1114 = vmatpush3.bf16.msra.mxu1 %v1752_v9 }
 0x144   : > { %1115 = vmatprep.subr.bf16.mxu1 %v1453_v0 }
 0x147   : > { %1116 = vmatpush3.bf16.msra.mxu1 %v1758_v11 }
 0x148   : > { %1117 = vmatprep.subr.bf16.mxu1 %v1453_v0 }
 0x14b   : > { %1118 = vmatpush3.bf16.msra.mxu1 %v1764_v13 }
 0x14c   : > { %1119 = vmatprep.subr.bf16.mxu1 %v1453_v0 }
 0x14f   : > { %1120 = vmatpush3.bf16.msra.mxu1 %v1770_v15 }
 0x150   : > { %1125 = vmatprep.subr.bf16.mxu1 %v1453_v0 }
 0x152   : > { %1122 = vmatmul.mubr.bf16.vlgmr.msra.gmra.mrb[4].mxu1 %v633_v35 }
 0x153   : > { %1126 = vmatpush3.bf16.msra.mxu1 %v1724_v2  ;;  %1141 = vmatprep.mubr.msk.bf16.mxu1 %vm1454_vm0, %v1453_v0 }
 0x154   : > { %1127 = vmatprep.subr.bf16.mxu1 %v1453_v0 }
 0x157   : > { %1128 = vmatpush3.bf16.msra.mxu1 %v1728_v3  ;;  %v733_v3 = vpop.permute.xlu0 %732 }
 0x158   : > { %1129 = vmatprep.subr.bf16.mxu1 %v1453_v0 }
 0x15b   : > { %1130 = vmatpush3.bf16.msra.mxu1 %v1735_v4 }
 0x15c   : > { %1131 = vmatprep.subr.bf16.mxu1 %v1453_v0 }
 0x15f   : > { %1132 = vmatpush3.bf16.msra.mxu1 %v1745_v7 }
 0x160   : > { %1133 = vmatprep.subr.bf16.mxu1 %v1453_v0 }
 0x163   : > { %1134 = vmatpush3.bf16.msra.mxu1 %v1752_v9 }
 0x164   : > { %1135 = vmatprep.subr.bf16.mxu1 %v1453_v0 }
 0x167   : > { %1136 = vmatpush3.bf16.msra.mxu1 %v1758_v11 }
 0x168   : > { %1137 = vmatprep.subr.bf16.mxu1 %v1453_v0 }
 0x16b   : > { %1138 = vmatpush3.bf16.msra.mxu1 %v1764_v13 }
 0x16c   : > { %1139 = vmatprep.subr.bf16.mxu1 %v1453_v0 }
 0x16f   : > { %1140 = vmatpush3.bf16.msra.mxu1 %v1770_v15 }
 0x172   : > { %1142 = vmatmul.mubr.bf16.vlgmr.msra.gmra.mrb[4].mxu1 %v630_v32 }
 0x1a8   : > { %v447_v36 = vpop.f32.mrb[0].mxu0 }
 0x1a9   : > { %v1023_v37 = vpop.f32.mrb[1].mxu0 }
 0x1aa   : > { %v450_v38 = vpop.f32.mrb[2].mxu0 }
 0x1ab   : > { %v1024_v39 = vpop.f32.mrb[3].mxu0 }
 0x205   : > { %v534_v40 = vpop.f32.mrb[0].mxu1 }
 0x206   : > { %v714_v41 = vmax.f32 %v447_v36, %v534_v40  ;;  %v1063_v42 = vpop.f32.mrb[1].mxu1 }
 0x207   : > { %v537_v43 = vpop.f32.mrb[2].mxu1 }
 0x208   : > { %v1064_v44 = vpop.f32.mrb[3].mxu1 }
 0x209   : > { %v621_v45 = vpop.f32.mrb[4].mxu0 }
 0x20a   : > { %v715_v46 = vmax.f32 %v714_v41, %v621_v45  ;;  %v1103_v47 = vpop.f32.mrb[5].mxu0 }
 0x20b   : > { %v624_v48 = vpop.f32.mrb[6].mxu0 }
 0x20c   : > { %v1104_v49 = vpop.f32.mrb[7].mxu0 }
 0x245   : > { %v708_v50 = vpop.f32.mrb[4].mxu1 }
 0x246   : > { %v716_v51 = vmax.f32 %v715_v46, %v708_v50  ;;  %v1143_v52 = vpop.f32.mrb[5].mxu1 }
 0x247   : > { %v711_v53 = vpop.f32.mrb[6].mxu1 }
 0x248   : > { %v717_v54 = vsub.f32 %v447_v36, %v716_v51  ;;  %v721_v55 = vsub.f32 %v534_v40, %v716_v51  ;;  %v729_v56 = vsub.f32 %v621_v45, %v716_v51  ;;  %v737_v57 = vsub.f32 %v708_v50, %v716_v51  ;;  %v1144_v58 = vpop.f32.mrb[7].mxu1 }
 0x24a   : > { %v718_v59 = vmul.f32 1.442695, %v717_v54  ;;  %v722_v60 = vmul.f32 1.442695, %v721_v55  ;;  %v730_v61 = vmul.f32 1.442695, %v729_v56 }
 0x24b   : > { %v738_v62 = vmul.f32 1.442695, %v737_v57 }
 0x24c   : > { %1243 = vpow2.f32 %v718_v59 }
 0x24d   : > { %1245 = vpow2.f32 %v722_v60 }
 0x24e   : > { %1247 = vpow2.f32 %v730_v61 }
 0x24f   : > { %1249 = vpow2.f32 %v738_v62 }
 0x256   : > { %v1244_v0 = vpop.eup %1243 }
 0x257   : > { %v1246_v1 = vpop.eup %1245  ;;  %v720_v2 = vmul.f32 %v1244_v0, %v1815_v17 }
 0x258   : > { %v1248_v4 = vpop.eup %1247  ;;  %v726_v5 = vadd.f32 %v1246_v1, %v1244_v0  ;;  %v727_v6 = vmul.f32 %v1246_v1, %v725_v63 }
 0x259   : > { %v1250_v7 = vpop.eup %1249  ;;  %v735_v11 = vmul.f32 %v1248_v4, %v733_v3 }
 0x25a   : > { %v734_v9 = vadd.f32 %v1248_v4, %v726_v5  ;;  %v728_v10 = vadd.f32 %v727_v6, %v720_v2  ;;  %v743_v13 = vmul.f32 %v1250_v7, %v741_v8 }
 0x25c   : > { %v742_v12 = vadd.f32 %v1250_v7, %v734_v9  ;;  %v736_v14 = vadd.f32 %v735_v11, %v728_v10 }
 0x25e   : > { %1251 = vrcp.f32 %v742_v12  ;;  %v744_v15 = vadd.f32 %v743_v13, %v736_v14 }
 0x268   : > { %v1252_v16 = vpop.eup %1251 }
 0x269   : > { %v746_v17 = vmul.f32 %v1252_v16, %v744_v15 }
 0x26b   : > { %747 = vst [vmem:[%s298_s18] sm:$0xff] %v746_v17 }
 0x26c   : > { %1384 = shalt.err (!%p1381_p11)
}
 0x26d   : > { %s1385_s28 = scalar_lea.hbm %s1904_s13, 128  ;;  %s1389_s25 = scalar_lea.hbm %s1952_s4, 256 }
 0x26e   : > { %p1386_p0 = scmp.ne.s32.totalorder %s1904_s13, %s1385_s28  ;;  %p1390_p8 = scmp.lt.u32.totalorder %s1904_s13, %s1952_s4 }
 0x26f   : > { %p1391_p1 = scmp.lt.u32.totalorder %s1389_s25, %s1385_s28  ;;  %p1393_p4 = scmp.lt.u32.totalorder %s1385_s28, %s1904_s13 }
 0x270   : > { %p1387_p13 = pnand %p1386_p0, %p1991_p9 }
 0x271   : > { %p1392_p2 = por %p1391_p1, %p1390_p8 }
 0x272   : > { %p1388_p10 = pneg %p1387_p13 }
 0x273   : > { %p1394_p12 = por %p1393_p4, %p1392_p2 }
 0x275   : > { %p1395_p6 = pnand %p1394_p12, %p1388_p10 }
 0x277   : > { %1398 = shalt.err (!%p1395_p6)
}
 0x278   : > { %1171 = dma.vmem_to_hbm [thread:$0]  (%p1991_p9), %s1906_s19, 128, %s1904_s13, %s749_s14  }
 0x279 PF: > { %s1992_s23 = sld [smem:[#allocation15_spill]]  ;;  %s1993_s26 = sld [smem:[#allocation19_spill]] }
 0x27a   : > { %s1994_s7 = sld [smem:[#allocation16_spill]] }
 0x27f   : > { %s774_s10 = sand.u32 1, %s1992_s23   ;;  %p1995_p3 = scmp.ne.s32.totalorder %s1993_s26, 0 }
 0x280   : > { %p1996_p5 = scmp.ge.s32.totalorder %s1994_s7, 2  ;;  %s775_s8 = scalar_lea.sflag [#allocation4], %s774_s10 }
 0x282   : > { %p1188_p7 = pnand %p1996_p5, %p1995_p3 }
 0x284   : > { %1428 = dma.done.wait (!%p1188_p7), %s775_s8, 128  }
 0x285   : > { %1430 = vsyncadd (!%p1188_p7), %s775_s8, 4294967168  ;;  %s1997_s18 = sld [smem:[#allocation17_spill]]  ;;  %s1998_s1 = sld [smem:[#allocation18_spill]] }
 0x286   : > { %s1999_s15 = smov %s1437_s16  ;;  %s2000_s16 = smov %s1441_s17 }
 0x28b   : > { %p21_p11 = scmp.ge.s32.totalorder %s1997_s18, 4   ;;  %s2001_s17 = smov %s1998_s1 }
 0x28d   :  { %23 = sbr.rel (!%p21_p11) target bundleno = 10 (0xa), region = 109 }
 0x294   :  { %780 = vsyncpa [#allocation3], 1 }
 0x295   :  { %782 = vsyncpa [#allocation3 + $0x1], 1 }
 0x296   :  { %783 = vsyncpa [#allocation6], 1 }
 0x297   :  { %785 = vsyncpa [#allocation6 + $0x1], 1 }
 0x298   :  { %786 = vsyncpa [#allocation9], 1 }
 0x299   :  { %787 = vsyncpa [#allocation4], 1 }
 0x29a   :  { %789 = vsyncpa [#allocation4 + $0x1], 1 }

</bundles_post_ra>
